<compile_context>
chip_gen: v5e
topology: v5e:2x2
jax: 0.10.0
libtpu: 0.0.40
codegen_flags: <defaults>
</compile_context>

<pallas_src>
import math

import jax
import jax.numpy as jnp
from jax.experimental import pallas as pl
from jax.experimental.pallas import tpu as pltpu


def _round_up(x: int, m: int) -> int:
    return ((x + m - 1) // m) * m


_VMEM_BUDGET = 40 * 1024 * 1024   # conservative working-set cap (v7x: 64 MiB VMEM)
_VMEM_LIMIT = 48 * 1024 * 1024    # scoped VMEM limit handed to Mosaic (all gens safe)


# ---------------------------------------------------------------------------
# Pass 1: support = X @ W   (row-tiled, computed exactly once)
# ---------------------------------------------------------------------------
def _support_kernel(x_ref, w_ref, s_ref):
    s_ref[...] = jnp.dot(
        x_ref[...], w_ref[...], preferred_element_type=jnp.float32
    ).astype(s_ref.dtype)


# ---------------------------------------------------------------------------
# Pass 2: out = adj @ support (+ bias), k-reduction, accumulate into o_ref
# ---------------------------------------------------------------------------
def _make_pass2_kernel(tk: int, has_bias: bool, resident_support: bool):
    def kernel(*refs):
        if has_bias:
            adj_ref, s_ref, b_ref, o_ref = refs
        else:
            adj_ref, s_ref, o_ref = refs

        k = pl.program_id(1)

        if resident_support:
            # Support lives fully in VMEM; slice out the k-th 128-aligned chunk.
            s_blk = s_ref[pl.ds(pl.multiple_of(k * tk, tk), tk), :]
        else:
            s_blk = s_ref[...]

        partial = jnp.dot(adj_ref[...], s_blk, preferred_element_type=jnp.float32)

        # o_ref is f32 and output-resident across the k axis: accumulate in place.
        @pl.when(k == 0)
        def _first():
            o_ref[...] = partial

        @pl.when(k > 0)
        def _accum():
            o_ref[...] += partial

        if has_bias:
            @pl.when(k == pl.num_programs(1) - 1)
            def _bias():
                o_ref[...] += b_ref[...]

    return kernel


def _pick_tiles(n_pad: int, f_pad: int, adj_itemsize: int, sup_itemsize: int):
    """Choose (tm, tk, resident_support) under a v7x-safe VMEM budget."""
    # Reduction tile: 128-aligned divisor of n_pad (bigger -> larger DMAs).
    tk = next(t for t in (512, 256, 128) if n_pad % t == 0)

    # Keep support fully VMEM-resident when it comfortably fits (<= ~12 MiB,
    # conservatively budgeted at 2x for pipeline buffering).
    resident = n_pad * f_pad * sup_itemsize <= 12 * 1024 * 1024
    sup_rows = n_pad if resident else tk

    tm = 128
    for cand in (2048, 1024, 512, 256):
        if n_pad % cand != 0:
            continue
        if n_pad // cand < 2:
            # >= 2 row tiles so both v7x TensorCores get work on the parallel axis.
            continue
        footprint = (2 * cand * tk * adj_itemsize          # adj tiles (double-buffered)
                     + 2 * sup_rows * f_pad * sup_itemsize  # support (conservative 2x)
                     + 2 * cand * f_pad * 4                 # output tiles
                     + 2 * f_pad * 4)                       # bias
        if footprint <= _VMEM_BUDGET:
            tm = cand
            break
    return tm, tk, resident


def graph_convolution(x, weight, adj, bias=None):
    """Pallas GCN forward.

    x      : [N, F_in]   node features (float32)
    weight : [F_in, F_out]
    adj    : [N, N]      dense adjacency.  Pass it in bf16 (cast once by the
                         caller) to halve the dominant HBM stream; f32 accumulation
                         is kept either way.
    bias   : [F_out] or None
    """
    n, f_in = x.shape
    f_in_w, f_out = weight.shape
    assert f_in == f_in_w
    assert adj.shape == (n, n)
    # Direct accumulation into the output block requires an f32 output.
    assert x.dtype == jnp.float32, "graph_convolution expects float32 features"
    out_dtype = jnp.float32

    mm_dtype = jnp.bfloat16 if adj.dtype == jnp.bfloat16 else jnp.float32
    adj_itemsize = jnp.dtype(mm_dtype).itemsize
    sup_itemsize = adj_itemsize

    f_pad = _round_up(f_out, 128)   # lane-dense output stores (no masked vst)
    n_pad = _round_up(n, 128)       # minimal, unavoidable alignment padding

    tm, tk, resident = _pick_tiles(n_pad, f_pad, adj_itemsize, sup_itemsize)

    # --- pad only what is strictly necessary (no padded N^2 copy if aligned) ---
    if n_pad == n:
        x_p = x
        adj_p = adj if adj.dtype == mm_dtype else adj.astype(mm_dtype)
    else:
        x_p = jnp.zeros((n_pad, f_in), x.dtype).at[:n, :].set(x)
        adj_p = (jnp.zeros((n_pad, n_pad), mm_dtype)
                 .at[:n, :n].set(adj.astype(mm_dtype)))
    if f_pad == f_out:
        w_p = weight.astype(jnp.float32)
    else:
        w_p = (jnp.zeros((f_in, f_pad), jnp.float32)
               .at[:, :f_out].set(weight.astype(jnp.float32)))

    # ---- pass 1: support = X @ W (once) -----------------------------------
    tm1 = tm
    while tm1 > 128 and (2 * tm1 * f_in * 4 + 2 * f_in * f_pad * 4
                         + 2 * tm1 * f_pad * sup_itemsize) > _VMEM_BUDGET:
        tm1 //= 2

    support = pl.pallas_call(
        _support_kernel,
        out_shape=jax.ShapeDtypeStruct((n_pad, f_pad), mm_dtype),
        grid_spec=pltpu.PrefetchScalarGridSpec(
            num_scalar_prefetch=0,
            grid=(n_pad // tm1,),
            in_specs=[
                pl.BlockSpec((tm1, f_in), lambda i: (i, 0)),
                pl.BlockSpec((f_in, f_pad), lambda i: (0, 0)),
            ],
            out_specs=pl.BlockSpec((tm1, f_pad), lambda i: (i, 0)),
        ),
        compiler_params=pltpu.CompilerParams(
            dimension_semantics=("parallel",),
            vmem_limit_bytes=_VMEM_LIMIT,
        ),
        cost_estimate=pl.CostEstimate(
            flops=2 * n_pad * f_in * f_pad,
            transcendentals=0,
            bytes_accessed=4 * n_pad * f_in + 4 * f_in * f_pad
            + sup_itemsize * n_pad * f_pad,
        ),
    )(x_p, w_p)

    # ---- pass 2: out = adj @ support (+ bias) ------------------------------
    n_row_tiles = n_pad // tm
    n_k_tiles = n_pad // tk
    has_bias = bias is not None

    adj_spec = pl.BlockSpec((tm, tk), lambda i, k: (i, k))
    if resident:
        sup_spec = pl.BlockSpec((n_pad, f_pad), lambda i, k: (0, 0))  # VMEM-resident
    else:
        sup_spec = pl.BlockSpec((tk, f_pad), lambda i, k: (k, 0))
    out_spec = pl.BlockSpec((tm, f_pad), lambda i, k: (i, 0))

    in_specs = [adj_spec, sup_spec]
    operands = [adj_p, support]
    if has_bias:
        b_p = (jnp.zeros((1, f_pad), jnp.float32)
               .at[0, :f_out].set(bias.astype(jnp.float32).reshape(f_out)))
        in_specs.append(pl.BlockSpec((1, f_pad), lambda i, k: (0, 0)))
        operands.append(b_p)

    sup_reads = 1 if resident else n_row_tiles

    out_p = pl.pallas_call(
        _make_pass2_kernel(tk, has_bias, resident),
        out_shape=jax.ShapeDtypeStruct((n_pad, f_pad), out_dtype),
        grid_spec=pltpu.PrefetchScalarGridSpec(
            num_scalar_prefetch=0,
            grid=(n_row_tiles, n_k_tiles),
            in_specs=in_specs,
            out_specs=out_spec,
        ),
        compiler_params=pltpu.CompilerParams(
            dimension_semantics=("parallel", "arbitrary"),
            vmem_limit_bytes=_VMEM_LIMIT,
        ),
        cost_estimate=pl.CostEstimate(
            flops=2 * n_pad * n_pad * f_pad,   # actual MXU work (incl. lane padding)
            transcendentals=0,
            bytes_accessed=(adj_itemsize * n_pad * n_pad
                            + sup_reads * sup_itemsize * n_pad * f_pad
                            + 4 * n_pad * f_pad
                            + (4 * f_pad if has_bias else 0)),
        ),
    )(*operands)

    return out_p[:n, :f_out]


def init_params(key, in_features, out_features, gain=0.02):
    """Xavier-normal weight (gain=0.02, as in reset_parameters_xavier), zero bias."""
    std = gain * math.sqrt(2.0 / (in_features + out_features))
    w = std * jax.random.normal(key, (in_features, out_features), dtype=jnp.float32)
    b = jnp.zeros((out_features,), dtype=jnp.float32)
    return w, b


def _make_graph(key, n):
    k_adj, = jax.random.split(key, 1)
    a = jax.random.uniform(k_adj, (n, n), dtype=jnp.float32)
    a = (a > 0.9).astype(jnp.float32)
    adj = a + a.T + jnp.eye(n, dtype=jnp.float32)
    return adj / jnp.sum(adj, axis=1, keepdims=True)


if __name__ == "__main__":
    key = jax.random.PRNGKey(0)
    k_x, k_adj, k_w, k_x2, k_adj2 = jax.random.split(key, 5)

    # --- case 1: 128-aligned N (no padding path), multi-tile rows + k-reduction
    N, F_IN, F_OUT = 384, 32, 48
    x = jax.random.normal(k_x, (N, F_IN), dtype=jnp.float32)
    adj = _make_graph(k_adj, N)
    weight, bias = init_params(k_w, F_IN, F_OUT)

    ref = adj @ (x @ weight)

    out = jax.block_until_ready(graph_convolution(x, weight, adj, bias))
    assert out.shape == (N, F_OUT)
    assert jnp.allclose(out, ref + bias, atol=1e-5, rtol=1e-5)

    out_nb = jax.block_until_ready(graph_convolution(x, weight, adj, None))
    assert jnp.allclose(out_nb, ref, atol=1e-5, rtol=1e-5)

    # --- case 2: ragged N (exercises the minimal-padding path)
    N2 = 200
    x2 = jax.random.normal(k_x2, (N2, F_IN), dtype=jnp.float32)
    adj2 = _make_graph(k_adj2, N2)
    ref2 = adj2 @ (x2 @ weight) + bias

    out2 = jax.block_until_ready(graph_convolution(x2, weight, adj2, bias))
    assert out2.shape == (N2, F_OUT)
    assert jnp.allclose(out2, ref2, atol=1e-5, rtol=1e-5)

    print("KERNEL_OK")
</pallas_src>

<mosaic_0001>
module attributes {stable_mosaic.version = 11 : i64} {
  func.func @_support_kernel(%arg0: i32, %arg1: memref<128x32xf32, #tpu.memory_space<vmem>>, %arg2: memref<32x128xf32, #tpu.memory_space<vmem>>, %arg3: memref<128x128xf32, #tpu.memory_space<vmem>>) attributes {dimension_semantics = [#tpu.dimension_semantics<parallel>], iteration_bounds = array<i64: 3>, scalar_prefetch = 0 : i64, scratch_operands = 0 : i64, tpu.core_type = #tpu.core_type<tc>, window_params = [{transform_indices = @transform_0, window_bounds = array<i64: 128, 32>}, {pipeline_mode = #tpu.pipeline_mode<synchronous>, transform_indices = @transform_1, window_bounds = array<i64: 32, 128>}, {transform_indices = @transform_2, window_bounds = array<i64: 128, 128>}]} {
    %c0 = arith.constant 0 : index
    %c0_0 = arith.constant 0 : index
    %0 = vector.load %arg1[%c0, %c0_0] : memref<128x32xf32, #tpu.memory_space<vmem>>, vector<128x32xf32>
    %c0_1 = arith.constant 0 : index
    %c0_2 = arith.constant 0 : index
    %1 = vector.load %arg2[%c0_1, %c0_2] : memref<32x128xf32, #tpu.memory_space<vmem>>, vector<32x128xf32>
    %cst = arith.constant dense<0.000000e+00> : vector<128x128xf32>
    %2 = tpu.matmul %0, %1, %cst {dimension_numbers = #tpu.dot_dimension_numbers<[1], [0], [0], [1], [0, 0, 1, 1], [], []>} : vector<128x32xf32>, vector<32x128xf32>, vector<128x128xf32> -> vector<128x128xf32>
    %c0_3 = arith.constant 0 : index
    %c0_4 = arith.constant 0 : index
    %3 = vector.load %arg3[%c0_3, %c0_4] : memref<128x128xf32, #tpu.memory_space<vmem>>, vector<128x128xf32>
    tpu.vector_store %arg3[%c0_3, %c0_4], %2 {strides = array<i32>} : memref<128x128xf32, #tpu.memory_space<vmem>>, vector<128x128xf32>,
    return
  }
  func.func @transform_0(%arg0: i32) -> (i32, i32) {
    %c0_i32 = arith.constant 0 : i32
    %c0_i32_0 = arith.constant 0 : i32
    return %arg0, %c0_i32 : i32, i32
  }
  func.func @transform_1(%arg0: i32) -> (i32, i32) {
    %c0_i32 = arith.constant 0 : i32
    %c0_i32_0 = arith.constant 0 : i32
    %c0_i32_1 = arith.constant 0 : i32
    return %c0_i32, %c0_i32_0 : i32, i32
  }
  func.func @transform_2(%arg0: i32) -> (i32, i32) {
    %c0_i32 = arith.constant 0 : i32
    %c0_i32_0 = arith.constant 0 : i32
    return %arg0, %c0_i32 : i32, i32
  }
}

</mosaic_0001>

<bundles_post_ra>
// kernel: tpu_custom_call.1
= control target key start
LH: loop header
LB: loop body
LE: loop exit
PB: predicated region body
PF: predicated region fallthrough
CT: control target
= control target key end

     0   :  { %7 = vsyncpa [#allocation3], 0  ;;  %s689_s0 = inlined_call_operand.vmem [shape: f32[384,32], index: 0, kind: input, shape index: {}]   ;;  %s690_s1 = inlined_call_operand.vmem [shape: f32[32,128], index: 1, kind: input, shape index: {}]   ;;  %s691_s2 = inlined_call_operand.hbm [shape: f32[384,128], index: 2, kind: output, shape index: {}]  }
   0x1   :  { %9 = vsyncpa [#allocation3 + $0x1], 0  ;;  %s536_s9 = smov 0   ;;  %s538_s10 = smov 0  }
   0x2   :  { %s540_s11 = smov 0   ;;  %s542_s12 = smov 0  }
   0x3 LB: > { %s557_s13 = sadd.s32 4294967295, %s517_s12   ;;  %s373_s14 = sadd.s32 4294967294, %s517_s12   ;;  %s517_s12 = sphi %s542_s12, %s697_s12   ;;  %s513_s11 = sphi %s540_s11, %s696_s11   ;;  %s509_s10 = sphi %s538_s10, %s695_s10   ;;  %s505_s9 = sphi %s536_s9, %s694_s9  }
   0x4   : > { %s561_s15 = sadd.s32 1, %s517_s12   ;;  %s69_s16 = sadd.s32 1, %s513_s11 }
   0x5   : > { %s66_s17 = ssub.s32 %s517_s12, %s561_s15  ;;  %p79_p0 = scmp.ne.s32.totalorder %s513_s11, %s509_s10 }
   0x6   : > { %p67_p1 = scmp.eq.s32.totalorder %s66_s17, 0  ;;  %p80_p2 = scmp.eq.s32.totalorder %s557_s13, 2 }
   0x7   : > { %p85_p3 = scmp.ne.s32.totalorder %s509_s10, %s505_s9  ;;  %p86_p4 = scmp.eq.s32.totalorder %s373_s14, 2 }
   0x8   : > { %s572_s18 = scalar_select %p67_p1, %s513_s11, %s69_s16  }
   0x9   : > { %p574_p5 = por %p80_p2, %p79_p0  ;;  %p578_p6 = por %p86_p4, %p85_p3 }
   0xa   : > { %p376_p7 = scmp.ge.s32.totalorder %s517_s12, 1  ;;  %p116_p8 = scmp.lt.s32.totalorder %s517_s12, 4 }
   0xc   : > { %p117_p9 = pnand %p376_p7, %p116_p8 }
   0xd   : > { %s378_s25 = sshll.u32 (!%p117_p9), %s557_s13, 4  ;;  %s135_s6 = sand.u32 (!%p117_p9), 1, %s509_s10  }
   0xe   : > { %120 = sbr.rel (%p117_p9) target bundleno = 188 (0xbc), region = 28  ;;  %p139_p10 = scmp.lt.s32.totalorder (!%p117_p9), %s378_s25, 47 }
   0xf   : > { %s377_s7 = sshll.u32 (!%p117_p9), %s135_s6, 7  ;;  %s401_s14 = sshll.u32 (!%p117_p9), %s557_s13, 7 }
  0x10   : > { %s637_s8 = scalar_lea.vmem (!%p117_p9), [#allocation2], %s377_s7  ;;  %s307_s21 = scalar_lea.hbm (!%p117_p9), %s691_s2, %s401_s14 }
  0x11   : > { %s308_s22 = sshll.u32 (!%p117_p9), %s637_s8, 4  ;;  %s310_s23 = sshll.u32 (!%p117_p9), %s307_s21, 4  ;;  %s309_s22 = int_to_ptr.vmem [resolvable:$true] %s308_s22  ;;  %s311_s23 = int_to_ptr.hbm [resolvable:$true] %s310_s23 }
  0x12   : > { %s296_s13 = scalar_lea.sflag (!%p117_p9), [#allocation3], %s135_s6  ;;  %s469_s24 = sshra.s32 (!%p117_p9), %s311_s23, 4  ;;  %s470_s24 = int_to_ptr.hbm [resolvable:$true] %s469_s24 }
  0x13   : > { %v164_v0 = vld [vmem:[%s690_s1 + $0x18] sm:$0xff]  ;;  %v163_v1 = vld [vmem:[%s690_s1 + $0x10] sm:$0xff]  ;;  %v162_v2 = vld [vmem:[%s690_s1 + $0x8] sm:$0xff]  ;;  %s699_s25 = smov (!%p139_p10, %s378_s25), 47  ;;  %vm165_vm0 = vcmask 261120   ;;  %s475_s28 = scalar_lea.hbm %s691_s2, 384 }
  0x14   : > { %403 = vmatpush.msra.mxu2 %v164_v0  ;;  %404 = vmatpush.msra.mxu3 %v164_v0  ;;  %v161_v3 = vld [vmem:[%s690_s1] sm:$0xff]  ;;  %s379_s30 = sshll.u32 %s699_s25, 3  ;;  %s471_s25 = scalar_lea.hbm %s470_s24, 128 }
  0x15   : > { %226 = vmatpush.msra.mxu0 %v164_v0  ;;  %402 = vmatpush.msra.mxu1 %v164_v0  ;;  %s600_s5 = scalar_lea.vmem %s689_s0, %s379_s30  ;;  %p472_p11 = scmp.ne.s32.totalorder %s470_s24, %s471_s25 }
  0x16   : > { %406 = vmatpush.msra.mxu2 %v163_v1  ;;  %407 = vmatpush.msra.mxu3 %v163_v1  ;;  %v153_v4 = vld [vmem:[%s600_s5 + $0x40] sm:$0xff]  ;;  %v154_v8 = vld [vmem:[%s600_s5 + $0x48] sm:$0xff]  ;;  %v155_v12 = vld [vmem:[%s600_s5 + $0x50] sm:$0xff]  ;;  %p476_p0 = scmp.lt.s32.totalorder %s470_s24, %s691_s2  ;;  %p477_p1 = scmp.lt.s32.totalorder %s475_s28, %s471_s25 }
  0x17   : > { %227 = vmatpush.msra.mxu0 %v163_v1  ;;  %405 = vmatpush.msra.mxu1 %v163_v1  ;;  %v157_v5 = vld [vmem:[%s600_s5 + $0x60] sm:$0xff]  ;;  %v158_v9 = vld [vmem:[%s600_s5 + $0x68] sm:$0xff]  ;;  %v159_v13 = vld [vmem:[%s600_s5 + $0x70] sm:$0xff]  ;;  %p473_p12 = pnand %p472_p11, %p574_p5 }
  0x18   : > { %409 = vmatpush.msra.mxu2 %v162_v2  ;;  %410 = vmatpush.msra.mxu3 %v162_v2  ;;  %v145_v6 = vld [vmem:[%s600_s5] sm:$0xff]  ;;  %v146_v10 = vld [vmem:[%s600_s5 + $0x8] sm:$0xff]  ;;  %v147_v14 = vld [vmem:[%s600_s5 + $0x10] sm:$0xff]  ;;  %p478_p2 = por %p477_p1, %p476_p0 }
  0x19   : > { %228 = vmatpush.msra.mxu0 %v162_v2  ;;  %408 = vmatpush.msra.mxu1 %v162_v2  ;;  %v149_v7 = vld [vmem:[%s600_s5 + $0x20] sm:$0xff]  ;;  %v150_v11 = vld [vmem:[%s600_s5 + $0x28] sm:$0xff]  ;;  %v151_v15 = vld [vmem:[%s600_s5 + $0x30] sm:$0xff]  ;;  %p474_p13 = pneg %p473_p12 }
  0x1a   : > { %412 = vmatpush.msra.mxu2 %v161_v3  ;;  %413 = vmatpush.msra.mxu3 %v161_v3  ;;  %v156_v16 = vld [vmem:[%s600_s5 + $0x58] sm:$0xff] }
  0x1b   : > { %388 = vmatmul.msk.f32.vlgmr.msra.gmra.mxu2 %vm165_vm0, %v153_v4  ;;  %392 = vmatmul.msk.f32.vlgmr.msra.gmra.mxu3 %vm165_vm0, %v157_v5  ;;  %v160_v17 = vld [vmem:[%s600_s5 + $0x78] sm:$0xff]  ;;  %p479_p3 = pnand %p478_p2, %p474_p13 }
  0x1c   : > { %229 = vmatpush.msra.mxu0 %v161_v3  ;;  %411 = vmatpush.msra.mxu1 %v161_v3  ;;  %v148_v18 = vld [vmem:[%s600_s5 + $0x18] sm:$0xff] }
  0x1d   : > { %380 = vmatmul.msk.f32.vlgmr.msra.gmra.mxu0 %vm165_vm0, %v145_v6  ;;  %384 = vmatmul.msk.f32.vlgmr.msra.gmra.mxu1 %vm165_vm0, %v149_v7  ;;  %v152_v19 = vld [vmem:[%s600_s5 + $0x38] sm:$0xff] }
  0x23   : > { %389 = vmatmul.msk.f32.gmra.mxu2 %vm165_vm0, %v154_v8  ;;  %393 = vmatmul.msk.f32.gmra.mxu3 %vm165_vm0, %v158_v9 }
  0x25   : > { %381 = vmatmul.msk.f32.gmra.mxu0 %vm165_vm0, %v146_v10  ;;  %385 = vmatmul.msk.f32.gmra.mxu1 %vm165_vm0, %v150_v11 }
  0x2b   : > { %390 = vmatmul.msk.f32.gmra.mxu2 %vm165_vm0, %v155_v12  ;;  %394 = vmatmul.msk.f32.gmra.mxu3 %vm165_vm0, %v159_v13 }
  0x2d   : > { %382 = vmatmul.msk.f32.gmra.mxu0 %vm165_vm0, %v147_v14  ;;  %386 = vmatmul.msk.f32.gmra.mxu1 %vm165_vm0, %v151_v15 }
  0x33   : > { %391 = vmatmul.msk.f32.gmra.mxu2 %vm165_vm0, %v156_v16  ;;  %395 = vmatmul.msk.f32.gmra.mxu3 %vm165_vm0, %v160_v17 }
  0x35   : > { %383 = vmatmul.msk.f32.gmra.mxu0 %vm165_vm0, %v148_v18  ;;  %387 = vmatmul.msk.f32.gmra.mxu1 %vm165_vm0, %v152_v19 }
  0x9a   : > { %v231_v20 = vpop.f32.mrf.mxu0  ;;  %v243_v21 = vpop.f32.mrf.mxu1 }
  0x9b   : > { %279 = vst [vmem:[%s637_s8] sm:$0xff] %v231_v20 }
  0x9c   : > { %283 = vst [vmem:[%s637_s8 + $0x20] sm:$0xff] %v243_v21 }
  0x9e   : > { %v255_v22 = vpop.f32.mrf.mxu2  ;;  %v267_v23 = vpop.f32.mrf.mxu3 }
  0x9f   : > { %287 = vst [vmem:[%s637_s8 + $0x40] sm:$0xff] %v255_v22 }
  0xa0   : > { %291 = vst [vmem:[%s637_s8 + $0x60] sm:$0xff] %v267_v23 }
  0xa2   : > { %v234_v24 = vpop.f32.mrf.mxu0  ;;  %v246_v25 = vpop.f32.mrf.mxu1 }
  0xa3   : > { %280 = vst [vmem:[%s637_s8 + $0x8] sm:$0xff] %v234_v24 }
  0xa4   : > { %284 = vst [vmem:[%s637_s8 + $0x28] sm:$0xff] %v246_v25 }
  0xa6   : > { %v258_v26 = vpop.f32.mrf.mxu2  ;;  %v270_v27 = vpop.f32.mrf.mxu3 }
  0xa7   : > { %288 = vst [vmem:[%s637_s8 + $0x48] sm:$0xff] %v258_v26 }
  0xa8   : > { %292 = vst [vmem:[%s637_s8 + $0x68] sm:$0xff] %v270_v27 }
  0xaa   : > { %v237_v28 = vpop.f32.mrf.mxu0  ;;  %v249_v29 = vpop.f32.mrf.mxu1 }
  0xab   : > { %281 = vst [vmem:[%s637_s8 + $0x10] sm:$0xff] %v237_v28 }
  0xac   : > { %285 = vst [vmem:[%s637_s8 + $0x30] sm:$0xff] %v249_v29 }
  0xae   : > { %v261_v30 = vpop.f32.mrf.mxu2  ;;  %v273_v31 = vpop.f32.mrf.mxu3 }
  0xaf   : > { %289 = vst [vmem:[%s637_s8 + $0x50] sm:$0xff] %v261_v30 }
  0xb0   : > { %293 = vst [vmem:[%s637_s8 + $0x70] sm:$0xff] %v273_v31 }
  0xb2   : > { %v240_v32 = vpop.f32.mrf.mxu0  ;;  %v252_v33 = vpop.f32.mrf.mxu1 }
  0xb3   : > { %282 = vst [vmem:[%s637_s8 + $0x18] sm:$0xff] %v240_v32 }
  0xb4   : > { %286 = vst [vmem:[%s637_s8 + $0x38] sm:$0xff] %v252_v33 }
  0xb6   : > { %v264_v34 = vpop.f32.mrf.mxu2  ;;  %v276_v35 = vpop.f32.mrf.mxu3 }
  0xb7   : > { %290 = vst [vmem:[%s637_s8 + $0x58] sm:$0xff] %v264_v34 }
  0xb8   : > { %294 = vst [vmem:[%s637_s8 + $0x78] sm:$0xff] %v276_v35 }
  0xb9   : > { %482 = shalt.err (!%p479_p3)
}
  0xba   : > { %s519_s3 = smov 128   ;;  %s520_s4 = smov 8  }
  0xbb   : > { %414 = dma.vmem_to_hbm [thread:$0]  (%p574_p5), %s309_s22, 2048, %s311_s23, %s296_s13, %s519_s3, %s519_s3, %s520_s4  }
  0xbc PF: > { %p420_p4 = scmp.ge.s32.totalorder %s517_s12, 2  ;;  %s325_s5 = sand.u32 1, %s505_s9  }
  0xbd   : > { %s326_s6 = scalar_lea.sflag [#allocation3], %s325_s5 }
  0xbe   : > { %p417_p7 = pnand %p420_p4, %p578_p6 }
  0xc0   : > { %p418_p8 = pneg %p417_p7 }
  0xc2   : > { %500 = dma.done.wait (%p418_p8), %s326_s6, 2048  }
  0xc3   : > { %502 = vsyncadd (%p418_p8), %s326_s6, 4294965248  ;;  %p12_p9 = scmp.ge.s32.totalorder %s561_s15, 5   ;;  %s694_s9 = smov %s509_s10 }
  0xc4   : > { %s695_s10 = smov %s513_s11  ;;  %s696_s11 = smov %s572_s18 }
  0xc5   : > { %s697_s12 = smov %s561_s15  ;;  %14 = sbr.rel (!%p12_p9) target bundleno = 3 (0x3), region = 63 }
  0xca   :  { %332 = vsyncpa [#allocation3], 1 }
  0xcb   :  { %334 = vsyncpa [#allocation3 + $0x1], 1 }

</bundles_post_ra>
